<compile_context>
chip_gen: v6e
topology: v6e:2x2x1
jax: 0.10.0
libtpu: 0.0.40
codegen_flags: <defaults>
</compile_context>

<pallas_src>
import functools

import jax
import jax.numpy as jnp
from jax.experimental import pallas as pl
from jax.experimental.pallas import tpu as pltpu


def _round_up(x, m):
    return ((x + m - 1) // m) * m


def _forward_dynamics_kernel(obs_ref, act_ref, w1o_ref, w1a_ref, b1_ref,
                             w2_ref, b2_ref, o_ref, h_ref, *, compute_dtype):
    # First layer: the concat is fused as two partial matmuls accumulated in f32.
    h = jnp.dot(obs_ref[...].astype(compute_dtype),
                w1o_ref[...].astype(compute_dtype),
                preferred_element_type=jnp.float32)
    h = h + jnp.dot(act_ref[...].astype(compute_dtype),
                    w1a_ref[...].astype(compute_dtype),
                    preferred_element_type=jnp.float32)
    # Bias + ReLU in f32; stage the (TB, 256) f32 hidden through VMEM scratch to keep
    # large batch tiles from spilling the vreg file.
    h_ref[...] = jnp.maximum(h + b1_ref[...], 0.0)
    out = jnp.dot(h_ref[...].astype(compute_dtype),
                  w2_ref[...].astype(compute_dtype),
                  preferred_element_type=jnp.float32) + b2_ref[...]
    o_ref[...] = out.astype(o_ref.dtype)


def prepare_params(params, latent_dim):
    """One-time layout transform (do this once, outside the hot path):
    split w1 so the concat can be fused, and zero-pad w2/b2's output feature dim
    up to a lane-dense multiple of 128."""
    H = params["w1"].shape[1]
    out_dim = params["w2"].shape[1]
    n_pad = max(128, _round_up(out_dim, 128))
    w2 = jnp.zeros((H, n_pad), params["w2"].dtype).at[:, :out_dim].set(params["w2"])
    b2 = jnp.zeros((1, n_pad), params["b2"].dtype).at[:, :out_dim].set(params["b2"])
    return {
        "w1_obs": params["w1"][:latent_dim],    # (latent_dim, 256)
        "w1_act": params["w1"][latent_dim:],    # (action_dim, 256)
        "b1": params["b1"],                     # (1, 256)
        "w2": w2,                               # (256, n_pad)
        "b2": b2,                               # (1, n_pad)
        "out_dim": out_dim,
    }


def forward_dynamics(obs, action, prepared, *, batch_tile=256,
                     compute_dtype=jnp.float32):
    """Pallas implementation of ForwardDynamicsModel.forward.

    obs:    (B, latent_dim) float32
    action: (B, action_dim) float32
    prepared: output of prepare_params()
    batch_tile: 256 is a good default for v6e/v7x; use 128 on v5e.
    compute_dtype: jnp.bfloat16 on v6e/v7x for 2x MXU throughput (accum stays f32).
    """
    B = obs.shape[0]
    latent_dim, H = prepared["w1_obs"].shape
    action_dim = prepared["w1_act"].shape[0]
    n_pad = prepared["w2"].shape[1]
    out_dim = prepared["out_dim"]

    # Batch tile: multiple of 8 sublanes; shrink to (padded) B for small batches.
    tb = min(batch_tile, _round_up(B, 8))
    b_pad = _round_up(B, tb)
    if b_pad != B:
        obs = jnp.pad(obs, ((0, b_pad - B), (0, 0)))
        action = jnp.pad(action, ((0, b_pad - B), (0, 0)))

    kernel = functools.partial(_forward_dynamics_kernel, compute_dtype=compute_dtype)

    out = pl.pallas_call(
        kernel,
        out_shape=jax.ShapeDtypeStruct((b_pad, n_pad), jnp.float32),
        grid=(b_pad // tb,),
        in_specs=[
            pl.BlockSpec((tb, latent_dim), lambda i: (i, 0)),   # obs tile
            pl.BlockSpec((tb, action_dim), lambda i: (i, 0)),   # action tile
            pl.BlockSpec((latent_dim, H), lambda i: (0, 0)),    # w1_obs (VMEM-resident)
            pl.BlockSpec((action_dim, H), lambda i: (0, 0)),    # w1_act
            pl.BlockSpec((1, H), lambda i: (0, 0)),             # b1
            pl.BlockSpec((H, n_pad), lambda i: (0, 0)),         # w2 (lane-padded)
            pl.BlockSpec((1, n_pad), lambda i: (0, 0)),         # b2 (lane-padded)
        ],
        out_specs=pl.BlockSpec((tb, n_pad), lambda i: (i, 0)),
        scratch_shapes=[pltpu.VMEM((tb, H), jnp.float32)],
        compiler_params=pltpu.CompilerParams(
            dimension_semantics=("parallel",),                  # batch axis -> megacore
        ),
    )(obs, action, prepared["w1_obs"], prepared["w1_act"], prepared["b1"],
      prepared["w2"], prepared["b2"])

    return out[:B, :out_dim]


def init_params(key, latent_dim, action_dim, hidden=256):
    """Deterministic init mirroring nn.Linear default (uniform +/- 1/sqrt(fan_in)),
    stored as (in_features, out_features) so the kernel computes x @ W + b."""
    d_in = latent_dim + action_dim
    k1, k2, k3, k4 = jax.random.split(key, 4)
    bound1 = 1.0 / jnp.sqrt(d_in)
    bound2 = 1.0 / jnp.sqrt(hidden)
    return {
        "w1": jax.random.uniform(k1, (d_in, hidden), jnp.float32, -bound1, bound1),
        "b1": jax.random.uniform(k2, (1, hidden), jnp.float32, -bound1, bound1),
        "w2": jax.random.uniform(k3, (hidden, latent_dim), jnp.float32, -bound2, bound2),
        "b2": jax.random.uniform(k4, (1, latent_dim), jnp.float32, -bound2, bound2),
    }


if __name__ == "__main__":
    latent_dim = 32
    action_dim = 8
    batch = 8

    key = jax.random.PRNGKey(0)
    k_obs, k_act, k_params = jax.random.split(key, 3)

    obs = jax.random.normal(k_obs, (batch, latent_dim), jnp.float32)
    action = jax.random.normal(k_act, (batch, action_dim), jnp.float32)
    params = init_params(k_params, latent_dim, action_dim)
    prepared = prepare_params(params, latent_dim)

    out = forward_dynamics(obs, action, prepared)
    out = jax.block_until_ready(out)

    # Pure-JAX reference of the same math (PyTorch semantics, f32).
    x = jnp.concatenate([obs, action], axis=1)
    ref = jnp.maximum(x @ params["w1"] + params["b1"], 0.0) @ params["w2"] + params["b2"]
    assert out.shape == (batch, latent_dim)
    assert jnp.allclose(out, ref, atol=1e-5, rtol=1e-5)

    print("KERNEL_OK")
</pallas_src>

<mosaic_0001>
module attributes {stable_mosaic.version = 11 : i64} {
  func.func @_forward_dynamics_kernel(%arg0: i32, %arg1: memref<8x32xf32, #tpu.memory_space<vmem>>, %arg2: memref<8x8xf32, #tpu.memory_space<vmem>>, %arg3: memref<32x256xf32, #tpu.memory_space<vmem>>, %arg4: memref<8x256xf32, #tpu.memory_space<vmem>>, %arg5: memref<1x256xf32, #tpu.memory_space<vmem>>, %arg6: memref<256x128xf32, #tpu.memory_space<vmem>>, %arg7: memref<1x128xf32, #tpu.memory_space<vmem>>, %arg8: memref<8x128xf32, #tpu.memory_space<vmem>>, %arg9: memref<8x256xf32, #tpu.memory_space<vmem>>) attributes {dimension_semantics = [#tpu.dimension_semantics<parallel>], iteration_bounds = array<i64: 1>, scalar_prefetch = 0 : i64, scratch_operands = 1 : i64, tpu.core_type = #tpu.core_type<tc>, window_params = [{transform_indices = @transform_0, window_bounds = array<i64: 8, 32>}, {transform_indices = @transform_1, window_bounds = array<i64: 8, 8>}, {pipeline_mode = #tpu.pipeline_mode<synchronous>, transform_indices = @transform_2, window_bounds = array<i64: 32, 256>}, {pipeline_mode = #tpu.pipeline_mode<synchronous>, transform_indices = @transform_3, window_bounds = array<i64: 8, 256>}, {pipeline_mode = #tpu.pipeline_mode<synchronous>, transform_indices = @transform_4, window_bounds = array<i64: 1, 256>}, {pipeline_mode = #tpu.pipeline_mode<synchronous>, transform_indices = @transform_5, window_bounds = array<i64: 256, 128>}, {pipeline_mode = #tpu.pipeline_mode<synchronous>, transform_indices = @transform_6, window_bounds = array<i64: 1, 128>}, {transform_indices = @transform_7, window_bounds = array<i64: 8, 128>}]} {
    %c0 = arith.constant 0 : index
    %c0_0 = arith.constant 0 : index
    %0 = vector.load %arg1[%c0, %c0_0] : memref<8x32xf32, #tpu.memory_space<vmem>>, vector<8x32xf32>
    %c0_1 = arith.constant 0 : index
    %c0_2 = arith.constant 0 : index
    %1 = vector.load %arg3[%c0_1, %c0_2] : memref<32x256xf32, #tpu.memory_space<vmem>>, vector<32x256xf32>
    %cst = arith.constant dense<0.000000e+00> : vector<8x256xf32>
    %2 = tpu.matmul %0, %1, %cst {dimension_numbers = #tpu.dot_dimension_numbers<[1], [0], [0], [1], [0, 0, 1, 1], [], []>} : vector<8x32xf32>, vector<32x256xf32>, vector<8x256xf32> -> vector<8x256xf32>
    %c0_3 = arith.constant 0 : index
    %c0_4 = arith.constant 0 : index
    %3 = vector.load %arg2[%c0_3, %c0_4] : memref<8x8xf32, #tpu.memory_space<vmem>>, vector<8x8xf32>
    %c0_5 = arith.constant 0 : index
    %c0_6 = arith.constant 0 : index
    %4 = vector.load %arg4[%c0_5, %c0_6] : memref<8x256xf32, #tpu.memory_space<vmem>>, vector<8x256xf32>
    %cst_7 = arith.constant dense<0.000000e+00> : vector<8x256xf32>
    %5 = tpu.matmul %3, %4, %cst_7 {dimension_numbers = #tpu.dot_dimension_numbers<[1], [0], [0], [1], [0, 0, 1, 1], [], []>} : vector<8x8xf32>, vector<8x256xf32>, vector<8x256xf32> -> vector<8x256xf32>
    %6 = arith.addf %2, %5 : vector<8x256xf32>
    %c0_8 = arith.constant 0 : index
    %c0_9 = arith.constant 0 : index
    %7 = vector.load %arg5[%c0_8, %c0_9] : memref<1x256xf32, #tpu.memory_space<vmem>>, vector<1x256xf32>
    %8 = vector.broadcast %7 : vector<1x256xf32> to vector<8x256xf32>
    %9 = arith.addf %6, %8 : vector<8x256xf32>
    %cst_10 = arith.constant 0.000000e+00 : f32
    %10 = vector.broadcast %cst_10 : f32 to vector<8x256xf32>
    %11 = arith.maximumf %9, %10 : vector<8x256xf32>
    %c0_11 = arith.constant 0 : index
    %c0_12 = arith.constant 0 : index
    %12 = vector.load %arg9[%c0_11, %c0_12] : memref<8x256xf32, #tpu.memory_space<vmem>>, vector<8x256xf32>
    tpu.vector_store %arg9[%c0_11, %c0_12], %11 {strides = array<i32>} : memref<8x256xf32, #tpu.memory_space<vmem>>, vector<8x256xf32>,
    %c0_13 = arith.constant 0 : index
    %c0_14 = arith.constant 0 : index
    %13 = vector.load %arg9[%c0_13, %c0_14] : memref<8x256xf32, #tpu.memory_space<vmem>>, vector<8x256xf32>
    %c0_15 = arith.constant 0 : index
    %c0_16 = arith.constant 0 : index
    %14 = vector.load %arg6[%c0_15, %c0_16] : memref<256x128xf32, #tpu.memory_space<vmem>>, vector<256x128xf32>
    %cst_17 = arith.constant dense<0.000000e+00> : vector<8x128xf32>
    %15 = tpu.matmul %13, %14, %cst_17 {dimension_numbers = #tpu.dot_dimension_numbers<[1], [0], [0], [1], [0, 0, 1, 1], [], []>} : vector<8x256xf32>, vector<256x128xf32>, vector<8x128xf32> -> vector<8x128xf32>
    %c0_18 = arith.constant 0 : index
    %c0_19 = arith.constant 0 : index
    %16 = vector.load %arg7[%c0_18, %c0_19] : memref<1x128xf32, #tpu.memory_space<vmem>>, vector<1x128xf32>
    %17 = vector.broadcast %16 : vector<1x128xf32> to vector<8x128xf32>
    %18 = arith.addf %15, %17 : vector<8x128xf32>
    %c0_20 = arith.constant 0 : index
    %c0_21 = arith.constant 0 : index
    %19 = vector.load %arg8[%c0_20, %c0_21] : memref<8x128xf32, #tpu.memory_space<vmem>>, vector<8x128xf32>
    tpu.vector_store %arg8[%c0_20, %c0_21], %18 {strides = array<i32>} : memref<8x128xf32, #tpu.memory_space<vmem>>, vector<8x128xf32>,
    return
  }
  func.func @transform_0(%arg0: i32) -> (i32, i32) {
    %c0_i32 = arith.constant 0 : i32
    %c0_i32_0 = arith.constant 0 : i32
    return %arg0, %c0_i32 : i32, i32
  }
  func.func @transform_1(%arg0: i32) -> (i32, i32) {
    %c0_i32 = arith.constant 0 : i32
    %c0_i32_0 = arith.constant 0 : i32
    return %arg0, %c0_i32 : i32, i32
  }
  func.func @transform_2(%arg0: i32) -> (i32, i32) {
    %c0_i32 = arith.constant 0 : i32
    %c0_i32_0 = arith.constant 0 : i32
    %c0_i32_1 = arith.constant 0 : i32
    return %c0_i32, %c0_i32_0 : i32, i32
  }
  func.func @transform_3(%arg0: i32) -> (i32, i32) {
    %c0_i32 = arith.constant 0 : i32
    %c0_i32_0 = arith.constant 0 : i32
    %c0_i32_1 = arith.constant 0 : i32
    return %c0_i32, %c0_i32_0 : i32, i32
  }
  func.func @transform_4(%arg0: i32) -> (i32, i32) {
    %c0_i32 = arith.constant 0 : i32
    %c0_i32_0 = arith.constant 0 : i32
    %c0_i32_1 = arith.constant 0 : i32
    return %c0_i32, %c0_i32_0 : i32, i32
  }
  func.func @transform_5(%arg0: i32) -> (i32, i32) {
    %c0_i32 = arith.constant 0 : i32
    %c0_i32_0 = arith.constant 0 : i32
    %c0_i32_1 = arith.constant 0 : i32
    return %c0_i32, %c0_i32_0 : i32, i32
  }
  func.func @transform_6(%arg0: i32) -> (i32, i32) {
    %c0_i32 = arith.constant 0 : i32
    %c0_i32_0 = arith.constant 0 : i32
    %c0_i32_1 = arith.constant 0 : i32
    return %c0_i32, %c0_i32_0 : i32, i32
  }
  func.func @transform_7(%arg0: i32) -> (i32, i32) {
    %c0_i32 = arith.constant 0 : i32
    %c0_i32_0 = arith.constant 0 : i32
    return %arg0, %c0_i32 : i32, i32
  }
}

</mosaic_0001>

<bundles_post_ra>
// kernel: tpu_custom_call.1
= control target key start
LH: loop header
LB: loop body
LE: loop exit
PB: predicated region body
PF: predicated region fallthrough
CT: control target
= control target key end

     0   :  { %12 = vsyncpa [#allocation4], 0  ;;  %s650_s0 = inlined_call_operand.hbm [shape: f32[8,32], index: 0, kind: input, shape index: {}]   ;;  %s651_s1 = inlined_call_operand.hbm [shape: f32[8,8], index: 1, kind: input, shape index: {}]   ;;  %s652_s2 = inlined_call_operand.hbm [shape: f32[32,256], index: 2, kind: input, shape index: {}]   ;;  %s653_s3 = inlined_call_operand.hbm [shape: f32[8,256], index: 3, kind: input, shape index: {}]   ;;  %s654_s4 = inlined_call_operand.vmem [shape: f32[1,256], index: 4, kind: input, shape index: {}]   ;;  %s655_s5 = inlined_call_operand.hbm [shape: f32[256,128], index: 5, kind: input, shape index: {}]   ;;  %s656_s6 = inlined_call_operand.vmem [shape: f32[1,128], index: 6, kind: input, shape index: {}]   ;;  %s657_s7 = inlined_call_operand.hbm [shape: f32[8,128], index: 7, kind: output, shape index: {}]  }
   0x1   :  { %13 = vsyncpa [#allocation7], 0 }
   0x2   :  { %14 = vsyncpa [#allocation10], 0 }
   0x3   :  { %15 = vsyncpa [#allocation5], 0  ;;  %s575_s24 = smov [#allocation6]   ;;  %s576_s26 = smov [#allocation9]  }
   0x4   :  { %s32_s25 = sshll.u32 %s575_s24, 4  ;;  %s54_s27 = sshll.u32 %s576_s26, 4  ;;  %s33_s25 = int_to_ptr.vmem [resolvable:$true] %s32_s25  ;;  %s55_s27 = int_to_ptr.vmem [resolvable:$true] %s54_s27 }
   0x5   :  { %s455_s28 = scalar_lea.vmem %s33_s25, 128  ;;  %p460_p1 = scmp.lt.s32.totalorder %s33_s25, %s33_s25 }
   0x6   :  { %p456_p0 = scmp.ne.s32.totalorder %s33_s25, %s455_s28  ;;  %p461_p2 = scmp.lt.s32.totalorder %s455_s28, %s455_s28 }
   0x8   :  { %p462_p3 = por %p461_p2, %p460_p1 }
   0xa   :  { %p463_p4 = pnand %p462_p3, %p456_p0 }
   0xc   :  { %466 = shalt.err (!%p463_p4)
}
   0xd   :  { %35 = dma.hbm_to_vmem [thread:$0]  %s651_s1, 128, %s33_s25, [#allocation7]  }
   0xe   :  { %s475_s8 = scalar_lea.vmem %s55_s27, 256  ;;  %p480_p6 = scmp.lt.s32.totalorder %s55_s27, %s55_s27 }
   0xf   :  { %p476_p5 = scmp.ne.s32.totalorder %s55_s27, %s475_s8  ;;  %p481_p7 = scmp.lt.s32.totalorder %s475_s8, %s475_s8 }
  0x11   :  { %p482_p8 = por %p481_p7, %p480_p6 }
  0x13   :  { %p483_p9 = pnand %p482_p8, %p476_p5 }
  0x15   :  { %486 = shalt.err (!%p483_p9)
}
  0x16   :  { %57 = dma.hbm_to_vmem [thread:$0]  %s653_s3, 256, %s55_s27, [#allocation10]  }
  0x17   :  { %s577_s11 = smov [#allocation3]   ;;  %s578_s13 = smov [#allocation8]  }
  0x18   :  { %s22_s12 = sshll.u32 %s577_s11, 4  ;;  %s41_s14 = sshll.u32 %s578_s13, 4  ;;  %s23_s12 = int_to_ptr.vmem [resolvable:$true] %s22_s12  ;;  %s42_s14 = int_to_ptr.vmem [resolvable:$true] %s41_s14 }
  0x19   :  { %s495_s15 = scalar_lea.vmem %s23_s12, 128  ;;  %p500_p11 = scmp.lt.s32.totalorder %s23_s12, %s23_s12 }
  0x1a   :  { %p496_p10 = scmp.ne.s32.totalorder %s23_s12, %s495_s15  ;;  %p501_p12 = scmp.lt.s32.totalorder %s495_s15, %s495_s15 }
  0x1c   :  { %p502_p13 = por %p501_p12, %p500_p11 }
  0x1e   :  { %p503_p0 = pnand %p502_p13, %p496_p10 }
  0x20   :  { %506 = shalt.err (!%p503_p0)
}
  0x21   :  { %25 = dma.hbm_to_vmem [thread:$0]  %s650_s0, 128, %s23_s12, [#allocation4]  }
  0x22   :  { %s515_s17 = scalar_lea.vmem %s42_s14, 1024  ;;  %p520_p2 = scmp.lt.s32.totalorder %s42_s14, %s42_s14 }
  0x23   :  { %p516_p1 = scmp.ne.s32.totalorder %s42_s14, %s515_s17  ;;  %p521_p3 = scmp.lt.s32.totalorder %s515_s17, %s515_s17 }
  0x25   :  { %p522_p4 = por %p521_p3, %p520_p2 }
  0x27   :  { %p523_p5 = pnand %p522_p4, %p516_p1 }
  0x29   :  { %526 = shalt.err (!%p523_p5)
}
  0x2a   :  { %s579_s3 = smov 256   ;;  %s580_s18 = smov 16  }
  0x2b   :  { %47 = dma.hbm_to_vmem [thread:$0]  %s652_s2, 1024, %s42_s14, [#allocation7], %s579_s3, %s579_s3, %s580_s18  }
  0x2c   :  { %s581_s21 = smov [#allocation11]  }
  0x2d   :  { %s65_s22 = sshll.u32 %s581_s21, 4  ;;  %s66_s22 = int_to_ptr.vmem [resolvable:$true] %s65_s22 }
  0x2e   :  { %s535_s23 = scalar_lea.vmem %s66_s22, 4096  ;;  %p540_p7 = scmp.lt.s32.totalorder %s66_s22, %s66_s22 }
  0x2f   :  { %p536_p6 = scmp.ne.s32.totalorder %s66_s22, %s535_s23  ;;  %p541_p8 = scmp.lt.s32.totalorder %s535_s23, %s535_s23 }
  0x31   :  { %p542_p9 = por %p541_p8, %p540_p7 }
  0x33   :  { %p543_p10 = pnand %p542_p9, %p536_p6 }
  0x35   :  { %546 = shalt.err (!%p543_p10)
}
  0x36   :  { %s582_s0 = smov 128   ;;  %s583_s24 = smov 8  }
  0x37   :  { %71 = dma.hbm_to_vmem [thread:$0]  %s655_s5, 4096, %s66_s22, [#allocation10], %s582_s0, %s582_s0, %s583_s24  }
  0x38   :  { %567 = dma.done.wait [#allocation4], 128  }
  0x39   :  { %568 = vsyncadd [#allocation4], 4294967168 }
  0x3a   :  { %569 = dma.done.wait [#allocation7], 1152  }
  0x3b   :  { %570 = vsyncadd [#allocation7], 4294966144 }
  0x3c   :  { %571 = dma.done.wait [#allocation10], 4352  }
  0x3d   :  { %572 = vsyncadd [#allocation10], 4294962944  ;;  %v584_v0 = vmov 0.0   ;;  %v100_v1 = vld [vmem:[#allocation9 + $0x8] sm:$0xff]  ;;  %v99_v2 = vld [vmem:[#allocation9] sm:$0xff]  ;;  %vm101_vm0 = vcmask 64512   ;;  %v253_v45 = vlaneseq }
  0x3e   :  { %169 = vmatprep.mubr.f32.mxu1 %v584_v0  ;;  %v98_v3 = vld [vmem:[#allocation6] sm:$0xff]  ;;  %135 = vmatprep.subr.mxu1 %v100_v1  ;;  %v96_v5 = vld [vmem:[#allocation8 + $0x30] sm:$0xff]  ;;  %v95_v6 = vld [vmem:[#allocation8 + $0x28] sm:$0xff]  ;;  %vm176_vm1 = vcmask 261120  }
  0x3f   :  { %v97_v4 = vld [vmem:[#allocation8 + $0x38] sm:$0xff]  ;;  %136 = vmatpush1.msra.mxu1 %v99_v2  ;;  %v94_v7 = vld [vmem:[#allocation8 + $0x20] sm:$0xff]  ;;  %v302_v9 = vld [vmem:[#allocation11 + $0xf8] sm:$0xff]  ;;  %v254_v46 = vshrl.u32 %v253_v45, 7 }
  0x40   :  { %398 = vmatmul.mubr.msk.f32.vlgmr.msra.gmra.mxu1 %vm101_vm0, %v98_v3  ;;  %204 = vmatprep.subr.mxu1 %v97_v4  ;;  %v93_v8 = vld [vmem:[#allocation8 + $0x18] sm:$0xff]  ;;  %v286_v10 = vld [vmem:[#allocation11 + $0x78] sm:$0xff]  ;;  %v301_v11 = vld [vmem:[#allocation11 + $0xf0] sm:$0xff] }
  0x41   :  { %205 = vmatpush1.msra.mxu1 %v96_v5  ;;  %244 = vmatprep.mubr.f32.mxu1 %v584_v0  ;;  %v92_v12 = vld [vmem:[#allocation8 + $0x10] sm:$0xff]  ;;  %v285_v13 = vld [vmem:[#allocation11 + $0x70] sm:$0xff]  ;;  %v91_v14 = vld [vmem:[#allocation8 + $0x8] sm:$0xff]  ;;  %v255_v48 = vsub.s32 0, %v254_v46  ;;  %v259_v50 = vsub.s32 1, %v254_v46 }
  0x42   :  { %206 = vmatprep.subr.mxu1 %v95_v6  ;;  %401 = vmatprep.subr.mxu0 %v302_v9  ;;  %v300_v15 = vld [vmem:[#allocation11 + $0xe8] sm:$0xff]  ;;  %v90_v16 = vld [vmem:[#allocation8] sm:$0xff]  ;;  %v89_v18 = vld [vmem:[#allocation3] sm:$0xff] }
  0x43   :  { %207 = vmatpush1.msra.mxu1 %v94_v7  ;;  %402 = vmatpush3.msra.mxu0 %v286_v10  ;;  %v284_v17 = vld [vmem:[#allocation11 + $0x68] sm:$0xff]  ;;  %v299_v19 = vld [vmem:[#allocation11 + $0xe0] sm:$0xff]  ;;  %v298_v21 = vld [vmem:[#allocation11 + $0xd8] sm:$0xff] }
  0x44   :  { %208 = vmatprep.subr.mxu1 %v93_v8  ;;  %403 = vmatprep.subr.mxu0 %v301_v11  ;;  %v283_v20 = vld [vmem:[#allocation11 + $0x60] sm:$0xff]  ;;  %v282_v22 = vld [vmem:[#allocation11 + $0x58] sm:$0xff]  ;;  %v297_v23 = vld [vmem:[#allocation11 + $0xd0] sm:$0xff] }
  0x45   :  { %209 = vmatpush1.msra.mxu1 %v92_v12  ;;  %404 = vmatpush3.msra.mxu0 %v285_v13  ;;  %v281_v24 = vld [vmem:[#allocation11 + $0x50] sm:$0xff]  ;;  %v296_v25 = vld [vmem:[#allocation11 + $0xc8] sm:$0xff]  ;;  %v295_v27 = vld [vmem:[#allocation11 + $0xc0] sm:$0xff] }
  0x46   :  { %210 = vmatprep.subr.mxu1 %v91_v14  ;;  %405 = vmatprep.subr.mxu0 %v300_v15  ;;  %v280_v26 = vld [vmem:[#allocation11 + $0x48] sm:$0xff]  ;;  %v279_v28 = vld [vmem:[#allocation11 + $0x40] sm:$0xff]  ;;  %v294_v29 = vld [vmem:[#allocation11 + $0xb8] sm:$0xff] }
  0x47   :  { %211 = vmatpush1.msra.mxu1 %v90_v16  ;;  %406 = vmatpush3.msra.mxu0 %v284_v17  ;;  %v278_v30 = vld [vmem:[#allocation11 + $0x38] sm:$0xff]  ;;  %v293_v31 = vld [vmem:[#allocation11 + $0xb0] sm:$0xff]  ;;  %v292_v33 = vld [vmem:[#allocation11 + $0xa8] sm:$0xff] }
  0x48   :  { %399 = vmatmul.mubr.msk.f32.vlgmr.msra.gmra.mxu1 %vm176_vm1, %v89_v18  ;;  %407 = vmatprep.subr.mxu0 %v299_v19  ;;  %v277_v32 = vld [vmem:[#allocation11 + $0x30] sm:$0xff]  ;;  %v276_v34 = vld [vmem:[#allocation11 + $0x28] sm:$0xff]  ;;  %v291_v35 = vld [vmem:[#allocation11 + $0xa0] sm:$0xff] }
  0x49   :  { %408 = vmatpush3.msra.mxu0 %v283_v20  ;;  %v275_v36 = vld [vmem:[#allocation11 + $0x20] sm:$0xff]  ;;  %v290_v37 = vld [vmem:[#allocation11 + $0x98] sm:$0xff]  ;;  %v289_v39 = vld [vmem:[#allocation11 + $0x90] sm:$0xff] }
  0x4a   :  { %409 = vmatprep.subr.mxu0 %v298_v21  ;;  %v274_v38 = vld [vmem:[#allocation11 + $0x18] sm:$0xff]  ;;  %v273_v40 = vld [vmem:[#allocation11 + $0x10] sm:$0xff]  ;;  %v288_v41 = vld [vmem:[#allocation11 + $0x88] sm:$0xff] }
  0x4b   :  { %410 = vmatpush3.msra.mxu0 %v282_v22  ;;  %v272_v42 = vld [vmem:[#allocation11 + $0x8] sm:$0xff]  ;;  %v287_v43 = vld [vmem:[#allocation11 + $0x80] sm:$0xff] }
  0x4c   :  { %411 = vmatprep.subr.mxu0 %v297_v23  ;;  %v271_v44 = vld [vmem:[#allocation11] sm:$0xff] }
  0x4d   :  { %412 = vmatpush3.msra.mxu0 %v281_v24  ;;  %v251_v49 = vld [vmem:[%s654_s4] sm:$0x3]  ;;  %s585_s4 = smov [#allocation12]  }
  0x4e   :  { %413 = vmatprep.subr.mxu0 %v296_v25  ;;  %v256_v53 = vrot.slane %v251_v49, %v255_v48  ;;  %v260_v55 = vrot.slane %v251_v49, %v259_v50  ;;  %v400_v63 = vld [vmem:[%s656_s6] ss:$0 sm:$0xff]  ;;  %s387_s29 = sshll.u32 %s585_s4, 4  ;;  %s388_s29 = int_to_ptr.vmem [resolvable:$true] %s387_s29 }
  0x4f   :  { %414 = vmatpush3.msra.mxu0 %v280_v26  ;;  %s547_s30 = scalar_lea.vmem %s388_s29, 128  ;;  %p552_p12 = scmp.lt.s32.totalorder %s388_s29, %s388_s29 }
  0x50   :  { %415 = vmatprep.subr.mxu0 %v295_v27  ;;  %p548_p11 = scmp.ne.s32.totalorder %s388_s29, %s547_s30  ;;  %p553_p13 = scmp.lt.s32.totalorder %s547_s30, %s547_s30 }
  0x51   :  { %416 = vmatpush3.msra.mxu0 %v279_v28 }
  0x52   :  { %417 = vmatprep.subr.mxu0 %v294_v29  ;;  %p554_p0 = por %p553_p13, %p552_p12 }
  0x53   :  { %418 = vmatpush3.msra.mxu0 %v278_v30 }
  0x54   :  { %419 = vmatprep.subr.mxu0 %v293_v31  ;;  %p555_p1 = pnand %p554_p0, %p548_p11 }
  0x55   :  { %420 = vmatpush3.msra.mxu0 %v277_v32 }
  0x56   :  { %421 = vmatprep.subr.mxu0 %v292_v33 }
  0x57   :  { %422 = vmatpush3.msra.mxu0 %v276_v34 }
  0x58   :  { %423 = vmatprep.subr.mxu0 %v291_v35 }
  0x59   :  { %424 = vmatpush3.msra.mxu0 %v275_v36 }
  0x5a   :  { %425 = vmatprep.subr.mxu0 %v290_v37 }
  0x5b   :  { %426 = vmatpush3.msra.mxu0 %v274_v38 }
  0x5c   :  { %427 = vmatprep.subr.mxu0 %v289_v39 }
  0x5d   :  { %428 = vmatpush3.msra.mxu0 %v273_v40 }
  0x5e   :  { %429 = vmatprep.subr.mxu0 %v288_v41 }
  0x5f   :  { %430 = vmatpush3.msra.mxu0 %v272_v42 }
  0x60   :  { %431 = vmatprep.subr.mxu0 %v287_v43 }
  0x61   :  { %432 = vmatpush3.msra.mxu0 %v271_v44 }
 0x100   :  { %v171_v47 = vpop.f32.mrf.mxu1 }
 0x102   :  { %v173_v51 = vpop.f32.mrf.mxu1 }
 0x108   :  { %v246_v52 = vpop.f32.mrf.mxu1 }
 0x109   :  { %v247_v54 = vadd.f32 %v246_v52, %v171_v47 }
 0x10a   :  { %v248_v56 = vpop.f32.mrf.mxu1 }
 0x10b   :  { %v249_v57 = vadd.f32 %v248_v56, %v173_v51  ;;  %v263_v58 = vadd.f32 %v256_v53, %v247_v54 }
 0x10d   :  { %v264_v59 = vadd.f32 %v260_v55, %v249_v57  ;;  %v265_v61 = vmax.f32 %v263_v58, 0.0 }
 0x10f   :  { %v266_v60 = vmax.f32 %v264_v59, 0.0 }
 0x111   :  { %374 = vmatprep.mubr.f32.mxu0 %v266_v60 }
 0x112   :  { %375 = vmatmul.mubr.f32.vlgmr.msra.gmra.mxu0 %v265_v61 }
 0x1d2   :  { %v433_v62 = vpop.f32.mrf.mxu0 }
 0x1d4   :  { %v434_v0 = vpop.f32.mrf.mxu0 }
 0x1d5   :  { %v435_v1 = vadd.f32 %v434_v0, %v433_v62 }
 0x1d7   :  { %v377_v2 = vadd.f32 %v435_v1, %v400_v63 }
 0x1d9   :  { %380 = vst [vmem:[#allocation12] sm:$0xff] %v377_v2 }
 0x1da   :  { %558 = shalt.err (!%p555_p1)
}
 0x1db   :  { %390 = dma.vmem_to_hbm [thread:$0]  %s388_s29, 128, %s657_s7, [#allocation5]  }
 0x1dc   :  { %573 = dma.done.wait [#allocation5], 128  }
 0x1dd   :  { %574 = vsyncadd [#allocation5], 4294967168 }
 0x1de   :  { %394 = vsyncpa [#allocation4], 1 }
 0x1df   :  { %395 = vsyncpa [#allocation7], 1 }
 0x1e0   :  { %396 = vsyncpa [#allocation10], 1 }
 0x1e1   :  { %397 = vsyncpa [#allocation5], 1 }

</bundles_post_ra>
